<compile_context>
chip_gen: v5e
topology: v5e:2x2
jax: 0.10.0
libtpu: 0.0.40
codegen_flags: <defaults>
</compile_context>

<pallas_src>
import jax
import jax.numpy as jnp
from jax import lax
from jax.experimental import pallas as pl
from jax.experimental.pallas import tpu as pltpu


def dis_sigmoid_kernel(x_ref, att_ref, w1x_ref, w1a_ref, b1_ref, w2t_ref, b2_ref, o_ref):
    # fc1 with the concat fused:  [x | att] @ W1  ==  x @ W1[:R] + att @ W1[R:]
    # (MXU, bf16 or f32 inputs, f32 accumulation.)
    h1 = (jnp.dot(x_ref[...], w1x_ref[...], preferred_element_type=jnp.float32)
          + jnp.dot(att_ref[...], w1a_ref[...], preferred_element_type=jnp.float32)
          + b1_ref[...])
    # LeakyReLU(0.2): max(h, 0.2*h) is one VALU op cheaper than cmp+select.
    h1 = jnp.maximum(h1, 0.2 * h1)
    # fc2 (single output unit) computed transposed so the result is LANE-DENSE:
    #   (1, ndh) . (tb, ndh)^T -> (1, tb)      [same NT pattern as dot(q, k.T)]
    h2 = lax.dot_general(w2t_ref[...], h1,
                         dimension_numbers=(((1,), (1,)), ((), ())),
                         preferred_element_type=jnp.float32) + b2_ref[...]
    # Sigmoid in f32 on the lane-dense (1, tb) slab (exp on the EUP).
    o_ref[...] = (1.0 / (1.0 + jnp.exp(-h2))).astype(o_ref.dtype)


def prepare_params(w1, b1, w2, b2, res_size, *, mxu_dtype=jnp.bfloat16):
    """Hoisted, call-once weight prep (review item): split W1 row-wise so the
    feature concat fuses into the kernel, reshape biases / fc2 weight to 2-D and
    cast the large MXU operands to `mxu_dtype`.  Post-MXU math stays f32."""
    ndh = w1.shape[1]
    w1x = w1[:res_size, :].astype(mxu_dtype)          # (res, ndh)
    w1a = w1[res_size:, :].astype(mxu_dtype)          # (att, ndh)
    b1_2d = b1.reshape(1, ndh).astype(jnp.float32)    # (1, ndh)
    w2t = w2.reshape(1, ndh).astype(jnp.float32)      # (1, ndh) fc2 weight row (tiny, keep f32)
    b2_2d = b2.reshape(1, 1).astype(jnp.float32)      # (1, 1)
    return w1x, w1a, b1_2d, w2t, b2_2d


def dis_sigmoid_forward(x, att, params, *, block_b=1024):
    """x: (B, res_size), att: (B, att_size), params from prepare_params.
    Returns sigmoid scores of shape (B, 1)."""
    w1x, w1a, b1_2d, w2t, b2_2d = params
    B, res_size = x.shape
    Bs, att_size = att.shape
    assert B == Bs
    assert w1x.shape[0] == res_size and w1a.shape[0] == att_size
    ndh = w1x.shape[1]

    out_dtype = x.dtype
    mxu_dtype = w1x.dtype
    # bf16 activations halve the dominant HBM reads (no-op if already mxu_dtype;
    # in a fused training graph this cast folds into x/att's producer).
    if x.dtype != mxu_dtype:
        x = x.astype(mxu_dtype)
    if att.dtype != mxu_dtype:
        att = att.astype(mxu_dtype)

    # ---- batch tiling ------------------------------------------------------
    assert block_b % 128 == 0, "block_b must be a multiple of 128 (lane-dense output blocks)"
    if B <= 256:
        tb = B                                   # single block; block dims == array dims
    else:
        # 128-aligned tiles, capped near B/2 so the grid has >= 2 "parallel"
        # steps (v7x megacore), and at most block_b.
        tb = min(block_b, pl.cdiv(pl.cdiv(B, 2), 128) * 128)
    grid = (pl.cdiv(B, tb),)
    # No jnp.pad: the ragged last block (if any) is handled by Pallas' boundary
    # masking; out-of-range output lanes are dropped.

    # ---- VMEM budget (only raise the limit when we'd exceed the scoped default)
    in_b = jnp.dtype(mxu_dtype).itemsize
    out_b = jnp.dtype(out_dtype).itemsize
    est = (2 * tb * (res_size + att_size) * in_b          # x/att tiles, double-buffered
           + 2 * tb * out_b                                # (1, tb) output tile, double-buffered
           + 2 * ((res_size + att_size) * ndh * in_b       # resident W1 halves (2 buffers)
                  + (2 * ndh + 1) * 4)                     # b1, w2 row, b2
           + tb * ndh * 4                                  # f32 h1 intermediate
           + (1 << 20))                                    # slack
    cp_kwargs = dict(dimension_semantics=("parallel",))    # batch tiles independent
    if est > 24 * 1024 * 1024:
        try:
            vmem_cap = pltpu.get_tpu_info().vmem_capacity_bytes
        except Exception:
            vmem_cap = 64 * 1024 * 1024                    # v7x per-TC VMEM (smallest recent gen)
        cp_kwargs["vmem_limit_bytes"] = int(min(2 * est, 7 * vmem_cap // 8))

    out = pl.pallas_call(
        dis_sigmoid_kernel,
        out_shape=jax.ShapeDtypeStruct((1, B), out_dtype),
        grid=grid,
        in_specs=[
            pl.BlockSpec((tb, res_size), lambda i: (i, 0)),    # x tile (moves with grid)
            pl.BlockSpec((tb, att_size), lambda i: (i, 0)),    # att tile (moves with grid)
            pl.BlockSpec((res_size, ndh), lambda i: (0, 0)),   # W1[:res]  (VMEM-resident)
            pl.BlockSpec((att_size, ndh), lambda i: (0, 0)),   # W1[res:]  (VMEM-resident)
            pl.BlockSpec((1, ndh), lambda i: (0, 0)),          # b1
            pl.BlockSpec((1, ndh), lambda i: (0, 0)),          # W2 row
            pl.BlockSpec((1, 1), lambda i: (0, 0)),            # b2
        ],
        out_specs=pl.BlockSpec((1, tb), lambda i: (0, i)),     # lane-dense output slab
        compiler_params=pltpu.CompilerParams(**cp_kwargs),
    )(x, att, w1x, w1a, b1_2d, w2t, b2_2d)

    return out.reshape(B, 1)                                   # (1, B) -> (B, 1): free reshape


def init_params(key, res_size, att_size, ndh, dtype=jnp.float32):
    """Mimics weights_init: Linear weights ~ N(0, 0.02), biases = 0.
    Stored as (in, out); distributionally identical to PyTorch's (out, in)."""
    k1, k2 = jax.random.split(key)
    w1 = (0.02 * jax.random.normal(k1, (res_size + att_size, ndh))).astype(dtype)
    b1 = jnp.zeros((ndh,), dtype)
    w2 = (0.02 * jax.random.normal(k2, (ndh, 1))).astype(dtype)
    b2 = jnp.zeros((1,), dtype)
    return w1, b1, w2, b2


def reference(x, att, w1, b1, w2, b2):
    _in = jnp.concatenate((x, att), axis=1)
    h1 = _in @ w1 + b1
    h1 = jnp.where(h1 > 0, h1, 0.2 * h1)
    return jax.nn.sigmoid(h1 @ w2 + b2)


if __name__ == "__main__":
    # shapes consistent with the module's forward (opt.res_size / att_size / ndh)
    res_size, att_size, ndh = 64, 16, 32

    key = jax.random.PRNGKey(0)
    kx, ka, kp, kx2, ka2, kx3, ka3 = jax.random.split(key, 7)
    w1, b1, w2, b2 = init_params(kp, res_size, att_size, ndh)

    # 1) exact f32 path, tiny batch (single full block, no tiling constraints)
    B = 8
    x = jax.random.normal(kx, (B, res_size), jnp.float32)
    att = jax.random.normal(ka, (B, att_size), jnp.float32)
    p_f32 = prepare_params(w1, b1, w2, b2, res_size, mxu_dtype=jnp.float32)
    out = jax.block_until_ready(dis_sigmoid_forward(x, att, p_f32))
    ref = reference(x, att, w1, b1, w2, b2)
    assert out.shape == (B, 1)
    assert jnp.allclose(out, ref, atol=1e-5, rtol=1e-5)

    # 2) default bf16-MXU path, multi-block grid with a ragged last block (no pad)
    p_bf16 = prepare_params(w1, b1, w2, b2, res_size)           # bf16 MXU operands
    B2 = 300
    x2 = jax.random.normal(kx2, (B2, res_size), jnp.float32)
    att2 = jax.random.normal(ka2, (B2, att_size), jnp.float32)
    out2 = jax.block_until_ready(dis_sigmoid_forward(x2, att2, p_bf16, block_b=128))
    ref2 = reference(x2, att2, w1, b1, w2, b2)
    assert out2.shape == (B2, 1)
    assert jnp.allclose(out2, ref2, atol=5e-3)

    # 3) default config: block_b=1024, exactly 2 parallel grid steps (megacore path)
    B3 = 2048
    x3 = jax.random.normal(kx3, (B3, res_size), jnp.float32)
    att3 = jax.random.normal(ka3, (B3, att_size), jnp.float32)
    out3 = jax.block_until_ready(dis_sigmoid_forward(x3, att3, p_bf16))
    ref3 = reference(x3, att3, w1, b1, w2, b2)
    assert out3.shape == (B3, 1)
    assert jnp.allclose(out3, ref3, atol=5e-3)

    print("KERNEL_OK")
</pallas_src>

<mosaic_0001>
module attributes {stable_mosaic.version = 11 : i64} {
  func.func @dis_sigmoid_kernel(%arg0: i32, %arg1: memref<8x64xf32, #tpu.memory_space<vmem>>, %arg2: memref<8x16xf32, #tpu.memory_space<vmem>>, %arg3: memref<64x32xf32, #tpu.memory_space<vmem>>, %arg4: memref<16x32xf32, #tpu.memory_space<vmem>>, %arg5: memref<1x32xf32, #tpu.memory_space<vmem>>, %arg6: memref<1x32xf32, #tpu.memory_space<vmem>>, %arg7: memref<1x1xf32, #tpu.memory_space<vmem>>, %arg8: memref<1x8xf32, #tpu.memory_space<vmem>>) attributes {dimension_semantics = [#tpu.dimension_semantics<parallel>], iteration_bounds = array<i64: 1>, scalar_prefetch = 0 : i64, scratch_operands = 0 : i64, tpu.core_type = #tpu.core_type<tc>, window_params = [{transform_indices = @transform_0, window_bounds = array<i64: 8, 64>}, {transform_indices = @transform_1, window_bounds = array<i64: 8, 16>}, {pipeline_mode = #tpu.pipeline_mode<synchronous>, transform_indices = @transform_2, window_bounds = array<i64: 64, 32>}, {pipeline_mode = #tpu.pipeline_mode<synchronous>, transform_indices = @transform_3, window_bounds = array<i64: 16, 32>}, {pipeline_mode = #tpu.pipeline_mode<synchronous>, transform_indices = @transform_4, window_bounds = array<i64: 1, 32>}, {pipeline_mode = #tpu.pipeline_mode<synchronous>, transform_indices = @transform_5, window_bounds = array<i64: 1, 32>}, {pipeline_mode = #tpu.pipeline_mode<synchronous>, transform_indices = @transform_6, window_bounds = array<i64: 1, 1>}, {transform_indices = @transform_7, window_bounds = array<i64: 1, 8>}]} {
    %c0 = arith.constant 0 : index
    %c0_0 = arith.constant 0 : index
    %0 = vector.load %arg1[%c0, %c0_0] : memref<8x64xf32, #tpu.memory_space<vmem>>, vector<8x64xf32>
    %c0_1 = arith.constant 0 : index
    %c0_2 = arith.constant 0 : index
    %1 = vector.load %arg3[%c0_1, %c0_2] : memref<64x32xf32, #tpu.memory_space<vmem>>, vector<64x32xf32>
    %cst = arith.constant dense<0.000000e+00> : vector<8x32xf32>
    %2 = tpu.matmul %0, %1, %cst {dimension_numbers = #tpu.dot_dimension_numbers<[1], [0], [0], [1], [0, 0, 1, 1], [], []>} : vector<8x64xf32>, vector<64x32xf32>, vector<8x32xf32> -> vector<8x32xf32>
    %c0_3 = arith.constant 0 : index
    %c0_4 = arith.constant 0 : index
    %3 = vector.load %arg2[%c0_3, %c0_4] : memref<8x16xf32, #tpu.memory_space<vmem>>, vector<8x16xf32>
    %c0_5 = arith.constant 0 : index
    %c0_6 = arith.constant 0 : index
    %4 = vector.load %arg4[%c0_5, %c0_6] : memref<16x32xf32, #tpu.memory_space<vmem>>, vector<16x32xf32>
    %cst_7 = arith.constant dense<0.000000e+00> : vector<8x32xf32>
    %5 = tpu.matmul %3, %4, %cst_7 {dimension_numbers = #tpu.dot_dimension_numbers<[1], [0], [0], [1], [0, 0, 1, 1], [], []>} : vector<8x16xf32>, vector<16x32xf32>, vector<8x32xf32> -> vector<8x32xf32>
    %6 = arith.addf %2, %5 : vector<8x32xf32>
    %c0_8 = arith.constant 0 : index
    %c0_9 = arith.constant 0 : index
    %7 = vector.load %arg5[%c0_8, %c0_9] : memref<1x32xf32, #tpu.memory_space<vmem>>, vector<1x32xf32>
    %8 = vector.broadcast %7 : vector<1x32xf32> to vector<8x32xf32>
    %9 = arith.addf %6, %8 : vector<8x32xf32>
    %cst_10 = arith.constant 2.000000e-01 : f32
    %10 = vector.broadcast %cst_10 : f32 to vector<8x32xf32>
    %11 = arith.mulf %10, %9 : vector<8x32xf32>
    %12 = arith.maximumf %9, %11 : vector<8x32xf32>
    %c0_11 = arith.constant 0 : index
    %c0_12 = arith.constant 0 : index
    %13 = vector.load %arg6[%c0_11, %c0_12] : memref<1x32xf32, #tpu.memory_space<vmem>>, vector<1x32xf32>
    %cst_13 = arith.constant dense<0.000000e+00> : vector<1x8xf32>
    %14 = tpu.matmul %13, %12, %cst_13 {dimension_numbers = #tpu.dot_dimension_numbers<[1], [1], [0], [0], [0, 0, 1, 0], [], []>} : vector<1x32xf32>, vector<8x32xf32>, vector<1x8xf32> -> vector<1x8xf32>
    %c0_14 = arith.constant 0 : index
    %c0_15 = arith.constant 0 : index
    %15 = vector.load %arg7[%c0_14, %c0_15] : memref<1x1xf32, #tpu.memory_space<vmem>>, vector<1x1xf32>
    %16 = vector.broadcast %15 : vector<1x1xf32> to vector<1x8xf32>
    %17 = arith.addf %14, %16 : vector<1x8xf32>
    %cst_16 = arith.constant 0.000000e+00 : f32
    %18 = vector.broadcast %cst_16 : f32 to vector<1x8xf32>
    %19 = arith.subf %18, %17 : vector<1x8xf32>
    %20 = math.exp %19 : vector<1x8xf32>
    %cst_17 = arith.constant 1.000000e+00 : f32
    %21 = vector.broadcast %cst_17 : f32 to vector<1x8xf32>
    %22 = arith.addf %21, %20 : vector<1x8xf32>
    %cst_18 = arith.constant 1.000000e+00 : f32
    %23 = vector.broadcast %cst_18 : f32 to vector<1x8xf32>
    %24 = arith.divf %23, %22 : vector<1x8xf32>
    %c0_19 = arith.constant 0 : index
    %c0_20 = arith.constant 0 : index
    %25 = vector.load %arg8[%c0_19, %c0_20] : memref<1x8xf32, #tpu.memory_space<vmem>>, vector<1x8xf32>
    tpu.vector_store %arg8[%c0_19, %c0_20], %24 {strides = array<i32>} : memref<1x8xf32, #tpu.memory_space<vmem>>, vector<1x8xf32>,
    return
  }
  func.func @transform_0(%arg0: i32) -> (i32, i32) {
    %c0_i32 = arith.constant 0 : i32
    %c0_i32_0 = arith.constant 0 : i32
    return %arg0, %c0_i32 : i32, i32
  }
  func.func @transform_1(%arg0: i32) -> (i32, i32) {
    %c0_i32 = arith.constant 0 : i32
    %c0_i32_0 = arith.constant 0 : i32
    return %arg0, %c0_i32 : i32, i32
  }
  func.func @transform_2(%arg0: i32) -> (i32, i32) {
    %c0_i32 = arith.constant 0 : i32
    %c0_i32_0 = arith.constant 0 : i32
    %c0_i32_1 = arith.constant 0 : i32
    return %c0_i32, %c0_i32_0 : i32, i32
  }
  func.func @transform_3(%arg0: i32) -> (i32, i32) {
    %c0_i32 = arith.constant 0 : i32
    %c0_i32_0 = arith.constant 0 : i32
    %c0_i32_1 = arith.constant 0 : i32
    return %c0_i32, %c0_i32_0 : i32, i32
  }
  func.func @transform_4(%arg0: i32) -> (i32, i32) {
    %c0_i32 = arith.constant 0 : i32
    %c0_i32_0 = arith.constant 0 : i32
    %c0_i32_1 = arith.constant 0 : i32
    return %c0_i32, %c0_i32_0 : i32, i32
  }
  func.func @transform_5(%arg0: i32) -> (i32, i32) {
    %c0_i32 = arith.constant 0 : i32
    %c0_i32_0 = arith.constant 0 : i32
    %c0_i32_1 = arith.constant 0 : i32
    return %c0_i32, %c0_i32_0 : i32, i32
  }
  func.func @transform_6(%arg0: i32) -> (i32, i32) {
    %c0_i32 = arith.constant 0 : i32
    %c0_i32_0 = arith.constant 0 : i32
    %c0_i32_1 = arith.constant 0 : i32
    return %c0_i32, %c0_i32_0 : i32, i32
  }
  func.func @transform_7(%arg0: i32) -> (i32, i32) {
    %c0_i32 = arith.constant 0 : i32
    %c0_i32_0 = arith.constant 0 : i32
    return %c0_i32, %arg0 : i32, i32
  }
}

</mosaic_0001>

<bundles_post_ra>
// kernel: tpu_custom_call.1
= control target key start
LH: loop header
LB: loop body
LE: loop exit
PB: predicated region body
PF: predicated region fallthrough
CT: control target
= control target key end

     0   :  { %s296_s0 = inlined_call_operand.vmem [shape: f32[8,64], index: 0, kind: input, shape index: {}]   ;;  %s297_s1 = inlined_call_operand.vmem [shape: f32[8,16], index: 1, kind: input, shape index: {}]   ;;  %s298_s2 = inlined_call_operand.vmem [shape: f32[64,32], index: 2, kind: input, shape index: {}]   ;;  %s299_s3 = inlined_call_operand.vmem [shape: f32[16,32], index: 3, kind: input, shape index: {}]   ;;  %s300_s4 = inlined_call_operand.vmem [shape: f32[1,32], index: 4, kind: input, shape index: {}]   ;;  %s301_s5 = inlined_call_operand.vmem [shape: f32[1,32], index: 5, kind: input, shape index: {}]   ;;  %s302_s6 = inlined_call_operand.<no memory space> [shape: f32[1,1], index: 6, kind: input, shape index: {}]   ;;  %s303_s7 = inlined_call_operand.hbm [shape: f32[1,8], index: 7, kind: output, shape index: {}]  }
   0x1   :  { %v12_v0 = vstv %s302_s6 }
   0x2   :  { %13 = vst [vmem:[#allocation2] sm:$0x1] %v12_v0 }
   0x3   :  { %v37_v1 = vld [vmem:[%s298_s2 + $0x38] sm:$0xff]  ;;  %v36_v2 = vld [vmem:[%s298_s2 + $0x30] sm:$0xff]  ;;  %v35_v3 = vld [vmem:[%s298_s2 + $0x28] sm:$0xff]  ;;  %vm41_vm0 = vcmask 130048  }
   0x4   :  { %77 = vmatpush.msra.mxu1 %v37_v1  ;;  %v40_v4 = vld [vmem:[%s299_s3 + $0x8] sm:$0xff]  ;;  %v39_v5 = vld [vmem:[%s299_s3] sm:$0xff] }
   0x5   :  { %59 = vmatpush.msra.mxu0 %v40_v4  ;;  %v38_v6 = vld [vmem:[%s297_s1] sm:$0xff] }
   0x6   :  { %78 = vmatpush.msra.mxu1 %v36_v2  ;;  %v34_v7 = vld [vmem:[%s298_s2 + $0x20] sm:$0xff] }
   0x7   :  { %14 = vsyncpa [#allocation4], 0  ;;  %60 = vmatpush.msra.mxu0 %v39_v5  ;;  %v33_v8 = vld [vmem:[%s298_s2 + $0x18] sm:$0xff]  ;;  %v32_v9 = vld [vmem:[%s298_s2 + $0x10] sm:$0xff]  ;;  %vm65_vm1 = vcmask 523264   ;;  %v206_v14 = vmov 0  }
   0x8   :  { %79 = vmatpush.msra.mxu1 %v35_v3  ;;  %168 = vmatmul.msk.f32.vlgmr.msra.gmra.mxu0 %vm41_vm0, %v38_v6  ;;  %v31_v10 = vld [vmem:[%s298_s2 + $0x8] sm:$0xff]  ;;  %v30_v11 = vld [vmem:[%s298_s2] sm:$0xff]  ;;  %vm104_vm2 = vcmask 261120   ;;  %s159_s28 = sshll.u32 %s303_s7, 4  ;;  %vm150_vm6 = vcmask 57344   ;;  %s160_s28 = int_to_ptr.hbm [resolvable:$true] %s159_s28 }
   0x9   :  { %v29_v12 = vld [vmem:[%s296_s0] sm:$0xff]  ;;  %174 = vset.pattern.permute.xlu0 %v206_v14 }
   0xa   :  { %80 = vmatpush.msra.mxu1 %v34_v7  ;;  %v97_v13 = vld [vmem:[#allocation2] sm:$0x1] }
   0xb   :  { %100 = vperm.xlu0 %174, %v97_v13   ;;  %v175_v16 = vld [vmem:[%s300_s4] ss:$0 sm:$0xff]  ;;  %s207_s4 = smov [#allocation3]  }
   0xc   :  { %81 = vmatpush.msra.mxu1 %v33_v8  ;;  %v96_v22 = vld [vmem:[%s301_s5] sm:$0x1]  ;;  %s157_s5 = sshll.u32 %s207_s4, 4  ;;  %s158_s5 = int_to_ptr.vmem [resolvable:$true] %s157_s5 }
   0xe   :  { %82 = vmatpush.msra.mxu1 %v32_v9 }
  0x10   :  { %83 = vmatpush.msra.mxu1 %v31_v10 }
  0x12   :  { %84 = vmatpush.msra.mxu1 %v30_v11 }
  0x13   :  { %169 = vmatmul.msk.f32.vlgmr.msra.gmra.mxu1 %vm65_vm1, %v29_v12 }
  0x7d   :  { %v101_v23 = vpop.permute.xlu0 %100 }
  0x7e   :  { %v103_v24 = vperm.slane %v101_v23, 0 }
  0x85   :  { %v62_v15 = vpop.f32.mrf.mxu0 }
  0x90   :  { %v86_v17 = vpop.f32.mrf.mxu1 }
  0x91   :  { %v87_v18 = vadd.f32 %v86_v17, %v62_v15 }
  0x93   :  { %v93_v19 = vadd.f32 %v175_v16, %v87_v18 }
  0x95   :  { %v94_v20 = vmul.f32 0.2, %v93_v19 }
  0x97   :  { %v95_v21 = vmax.f32 %v93_v19, %v94_v20 }
  0x99   :  { %170 = vmatpush.xpose.msk.msra.mxu2 %vm104_vm2, %v95_v21 }
  0x9c   :  { %171 = vmatmul.msk.f32.vlgmr.msra.gmra.mxu2 %vm104_vm2, %v96_v22 }
 0x11f   :  { %v128_v25 = vpop.f32.mrf.mxu2 }
 0x120   :  { %v129_v26 = vadd.f32 %v128_v25, %v103_v24 }
 0x122   :  { %v131_v27 = vsub.f32 0.0, %v129_v26 }
 0x124   :  { %v132_v28 = vmul.f32 1.442695, %v131_v27 }
 0x126   :  { %176 = vpow2.f32 %v132_v28 }
 0x12c   :  { %v177_v29 = vpop.eup %176 }
 0x12d   :  { %v134_v30 = vadd.f32 1.0, %v177_v29 }
 0x12f   :  { %178 = vrcp.f32 %v134_v30  ;;  %v146_v34 = vand.u32 2147483648, %v134_v30  ;;  %v144_v36 = vand.u32 2147483647, %v134_v30  ;;  %vm140_vm4 = vweird.f32 %v134_v30 }
 0x131   :  { %v147_v38 = vor.u32 1.1754944e-38, %v146_v34  ;;  %vm145_vm7 = vcmp.eq.f32.partialorder %v144_v36, 8.507059e+37 }
 0x135   :  { %v179_v31 = vpop.eup %178 }
 0x136   :  { %v136_v32 = vmul.f32 %v179_v31, %v134_v30  ;;  %vm141_vm3 = vweird.f32 %v179_v31 }
 0x137   :  { %vm142_vm5 = vmor %vm140_vm4, %vm141_vm3 }
 0x138   :  { %v137_v33 = vsub.f32 1.0, %v136_v32 }
 0x13a   :  { %v138_v35 = vmul.f32 %v179_v31, %v137_v33 }
 0x13c   :  { %v139_v37 = vadd.f32 %v179_v31, %v138_v35 }
 0x13e   :  { %v143_v39 = vsel %vm142_vm5, %v179_v31, %v139_v37 }
 0x13f   :  { %v148_v40 = vsel %vm145_vm7, %v147_v38, %v143_v39 }
 0x140   :  { %151 = vst.msk [vmem:[#allocation3] sm:$0x1] %vm150_vm6, %v148_v40 }
 0x141   :  { %162 = dma.vmem_to_hbm [thread:$0]  %s158_s5, 16, %s160_s28, [#allocation4]  }
 0x142   :  { %204 = dma.done.wait [#allocation4], 16  }
 0x143   :  { %205 = vsyncadd [#allocation4], 4294967280 }
 0x144   :  { %167 = vsyncpa [#allocation4], 1 }

</bundles_post_ra>
